<compile_context>
chip_gen: v7x
topology: tpu7x:2x2x1
jax: 0.10.0
libtpu: 0.0.40
codegen_flags: <defaults>
</compile_context>

<pallas_src>
import jax
import jax.numpy as jnp
from jax.experimental import pallas as pl
from jax.experimental.pallas import tpu as pltpu


def _ensemble_kernel(x_ref, w_ref, b_ref, o_ref):
    """One row-tile: logits = x @ W_eff + b_eff; write log_softmax(logits).

    x_ref: (TM, D)   bf16/f32  -- tile of flattened sequence features
    w_ref: (D, Kp)   bf16/f32  -- pre-averaged ensemble projection weights
    b_ref: (1, Kp)   f32       -- pre-averaged ensemble bias (padded cols = -1e30)
    o_ref: (TM, Kp)  f32       -- log-probabilities for this row tile
    """
    # Single MXU matmul, f32 accumulation.
    logits = jnp.dot(x_ref[...], w_ref[...], preferred_element_type=jnp.float32)
    logits = logits + b_ref[...]  # (1, Kp) broadcasts over rows, f32 VPU add.

    # log_softmax over the class axis (dim=2 of [B, T, K]) in f32.
    row_max = jnp.max(logits, axis=-1, keepdims=True)
    shifted = logits - row_max
    lse = jnp.log(jnp.sum(jnp.exp(shifted), axis=-1, keepdims=True))
    o_ref[...] = shifted - lse


def _pick_row_tile(rows, requested):
    """Pick a sublane-aligned row tile; keep >= 2 grid steps when rows allow (v7x)."""
    tile = min(requested, rows)
    if rows > 8 and tile > rows // 2:
        tile = rows // 2
    tile = max(8, (tile // 8) * 8)
    return tile


def ensemble_char_model(img, weights, biases, *, row_tile=256, use_bf16=True):
    """img: [B, C, H, W]; weights: [M, D, K]; biases: [M, K]; D = C*H.

    Returns f32 log-probabilities of shape [B, T, K] with T = W
    (matches F.log_softmax(sum_m model_m(img) / M, dim=2)).
    """
    b, c, h, w = img.shape
    m, d, k = weights.shape
    assert d == c * h, "feature dim must equal C*H"

    # --- Algebraic ensemble collapse (exact): mean over members, done once. ---
    w_eff = jnp.mean(weights.astype(jnp.float32), axis=0)   # (D, K)
    b_eff = jnp.mean(biases.astype(jnp.float32), axis=0)    # (K,)

    # NCHW -> [B, W, C, H] -> [B*T, D]; columns are timesteps (CRNN layout).
    x_seq = jnp.transpose(img, (0, 3, 1, 2)).reshape(b * w, d)
    rows = b * w

    # --- Row tiling: big tiles, sublane aligned, grid >= 2 when possible. ---
    tile = _pick_row_tile(rows, row_tile)
    rows_p = pl.cdiv(rows, tile) * tile
    if rows_p != rows:
        x_seq = jnp.pad(x_seq, ((0, rows_p - rows), (0, 0)))

    # --- Pad classes to a multiple of 128 (lane-dense output stores). ---
    kp = k + (-k) % 128
    if kp != k:
        w_eff = jnp.pad(w_eff, ((0, 0), (0, kp - k)))
        # Padded classes get a huge negative bias -> exp underflows to 0, so the
        # log_softmax over the real classes is unchanged.
        b_eff = jnp.pad(b_eff, ((0, kp - k),), constant_values=-1e30)
    b_eff = b_eff.reshape(1, kp).astype(jnp.float32)

    mat_dtype = jnp.bfloat16 if use_bf16 else jnp.float32
    x_in = x_seq.astype(mat_dtype)
    w_in = w_eff.astype(mat_dtype)

    # Explicit VMEM budget: x double-buffered + resident W/b + double-buffered out.
    isz = jnp.dtype(mat_dtype).itemsize
    vmem_need = 2 * tile * d * isz + d * kp * isz + kp * 4 + 2 * tile * kp * 4
    vmem_limit = int(min(max(2 * vmem_need, 16 * 2**20), 48 * 2**20))

    out_flat = pl.pallas_call(
        _ensemble_kernel,
        out_shape=jax.ShapeDtypeStruct((rows_p, kp), jnp.float32),
        grid_spec=pltpu.PrefetchScalarGridSpec(
            num_scalar_prefetch=0,
            grid=(rows_p // tile,),
            in_specs=[
                pl.BlockSpec((tile, d), lambda i: (i, 0)),   # x rows: tiled
                pl.BlockSpec((d, kp), lambda i: (0, 0)),     # W_eff: grid-invariant
                pl.BlockSpec((1, kp), lambda i: (0, 0)),     # b_eff: grid-invariant
            ],
            out_specs=pl.BlockSpec((tile, kp), lambda i: (i, 0)),
        ),
        compiler_params=pltpu.CompilerParams(
            dimension_semantics=("parallel",),
            # Let XLA fuse the NCHW transpose/reshape/cast into the x operand.
            allow_input_fusion=[True, False, False],
            vmem_limit_bytes=vmem_limit,
        ),
    )(x_in, w_in, b_eff)

    return out_flat[:rows, :k].reshape(b, w, k)


# ----------------------------- references -----------------------------------

def _reference_kernel_math(img, weights, biases, use_bf16=True):
    """Same math as the kernel (pre-summed weights, bf16 matmul, f32 softmax)."""
    b, c, h, w = img.shape
    d = c * h
    w_eff = jnp.mean(weights.astype(jnp.float32), axis=0)
    b_eff = jnp.mean(biases.astype(jnp.float32), axis=0)
    x_seq = jnp.transpose(img, (0, 3, 1, 2)).reshape(b, w, d)
    dt = jnp.bfloat16 if use_bf16 else jnp.float32
    logits = jnp.einsum(
        "btd,dk->btk", x_seq.astype(dt), w_eff.astype(dt),
        preferred_element_type=jnp.float32) + b_eff
    return jax.nn.log_softmax(logits, axis=2)


def _reference_full_precision(img, weights, biases):
    """Faithful f32 port of the PyTorch module: per-model logits, sum, /M, log_softmax."""
    b, c, h, w = img.shape
    m = weights.shape[0]
    x_seq = jnp.transpose(img, (0, 3, 1, 2)).reshape(b, w, c * h)
    result = None
    for i in range(m):
        out_i = jnp.einsum("btd,dk->btk", x_seq, weights[i]) + biases[i]
        result = out_i if result is None else result + out_i
    return jax.nn.log_softmax(result * (1.0 / m), axis=2)


if __name__ == "__main__":
    # Small, deterministic example shapes.
    B, C, H, W = 2, 4, 16, 16   # img NCHW
    M = 3                       # number of ensembled models
    D = C * H                   # per-timestep feature dim (64)
    K = 128                     # number of character classes

    key = jax.random.PRNGKey(0)
    k_img, k_w, k_b = jax.random.split(key, 3)

    img = jax.random.normal(k_img, (B, C, H, W), dtype=jnp.float32)
    weights = jax.random.normal(k_w, (M, D, K), dtype=jnp.float32) * 0.05
    biases = jax.random.normal(k_b, (M, K), dtype=jnp.float32) * 0.01

    out = ensemble_char_model(img, weights, biases)
    out = jax.block_until_ready(out)
    assert out.shape == (B, W, K)

    # Tight check against an identical-math reference (bf16 matmul, f32 accum).
    ref_exact = jax.block_until_ready(_reference_kernel_math(img, weights, biases))
    assert jnp.allclose(out, ref_exact, atol=1e-3, rtol=1e-3)

    # Looser check against the full-precision, per-model PyTorch-equivalent math
    # (difference is only the bf16 cast of the matmul inputs).
    ref_full = jax.block_until_ready(_reference_full_precision(img, weights, biases))
    assert jnp.allclose(out, ref_full, atol=3e-2, rtol=3e-2)

    # Sanity: rows are valid log-probability distributions.
    assert jnp.allclose(jnp.sum(jnp.exp(out), axis=-1), 1.0, atol=1e-3)

    print("KERNEL_OK")
</pallas_src>

<mosaic_0001>
module attributes {stable_mosaic.version = 11 : i64} {
  func.func @_ensemble_kernel(%arg0: i32, %arg1: memref<16x64xbf16, #tpu.memory_space<vmem>>, %arg2: memref<64x128xbf16, #tpu.memory_space<vmem>>, %arg3: memref<1x128xf32, #tpu.memory_space<vmem>>, %arg4: memref<16x128xf32, #tpu.memory_space<vmem>>) attributes {dimension_semantics = [#tpu.dimension_semantics<parallel>], iteration_bounds = array<i64: 2>, scalar_prefetch = 0 : i64, scratch_operands = 0 : i64, tpu.core_type = #tpu.core_type<tc>, window_params = [{transform_indices = @transform_0, window_bounds = array<i64: 16, 64>}, {pipeline_mode = #tpu.pipeline_mode<synchronous>, transform_indices = @transform_1, window_bounds = array<i64: 64, 128>}, {pipeline_mode = #tpu.pipeline_mode<synchronous>, transform_indices = @transform_2, window_bounds = array<i64: 1, 128>}, {transform_indices = @transform_3, window_bounds = array<i64: 16, 128>}]} {
    %c0 = arith.constant 0 : index
    %c0_0 = arith.constant 0 : index
    %0 = vector.load %arg1[%c0, %c0_0] : memref<16x64xbf16, #tpu.memory_space<vmem>>, vector<16x64xbf16>
    %c0_1 = arith.constant 0 : index
    %c0_2 = arith.constant 0 : index
    %1 = vector.load %arg2[%c0_1, %c0_2] : memref<64x128xbf16, #tpu.memory_space<vmem>>, vector<64x128xbf16>
    %cst = arith.constant dense<0.000000e+00> : vector<16x128xf32>
    %2 = tpu.matmul %0, %1, %cst {dimension_numbers = #tpu.dot_dimension_numbers<[1], [0], [0], [1], [0, 0, 1, 1], [], []>} : vector<16x64xbf16>, vector<64x128xbf16>, vector<16x128xf32> -> vector<16x128xf32>
    %c0_3 = arith.constant 0 : index
    %c0_4 = arith.constant 0 : index
    %3 = vector.load %arg3[%c0_3, %c0_4] : memref<1x128xf32, #tpu.memory_space<vmem>>, vector<1x128xf32>
    %4 = vector.broadcast %3 : vector<1x128xf32> to vector<16x128xf32>
    %5 = arith.addf %2, %4 : vector<16x128xf32>
    %cst_5 = arith.constant dense<0xFF800000> : vector<16xf32>
    %6 = vector.multi_reduction <maximumf>, %5, %cst_5 [1] : vector<16x128xf32> to vector<16xf32>
    %7 = vector.shape_cast %6 : vector<16xf32> to vector<16x1xf32>
    %8 = vector.broadcast %7 : vector<16x1xf32> to vector<16x128xf32>
    %9 = arith.subf %5, %8 : vector<16x128xf32>
    %10 = math.exp %9 : vector<16x128xf32>
    %cst_6 = arith.constant dense<0.000000e+00> : vector<16xf32>
    %11 = vector.multi_reduction <add>, %10, %cst_6 [1] : vector<16x128xf32> to vector<16xf32>
    %12 = vector.shape_cast %11 : vector<16xf32> to vector<16x1xf32>
    %13 = math.log %12 : vector<16x1xf32>
    %14 = vector.broadcast %13 : vector<16x1xf32> to vector<16x128xf32>
    %15 = arith.subf %9, %14 : vector<16x128xf32>
    %c0_7 = arith.constant 0 : index
    %c0_8 = arith.constant 0 : index
    %16 = vector.load %arg4[%c0_7, %c0_8] : memref<16x128xf32, #tpu.memory_space<vmem>>, vector<16x128xf32>
    tpu.vector_store %arg4[%c0_7, %c0_8], %15 {strides = array<i32>} : memref<16x128xf32, #tpu.memory_space<vmem>>, vector<16x128xf32>,
    return
  }
  func.func @transform_0(%arg0: i32) -> (i32, i32) {
    %c0_i32 = arith.constant 0 : i32
    %c0_i32_0 = arith.constant 0 : i32
    return %arg0, %c0_i32 : i32, i32
  }
  func.func @transform_1(%arg0: i32) -> (i32, i32) {
    %c0_i32 = arith.constant 0 : i32
    %c0_i32_0 = arith.constant 0 : i32
    %c0_i32_1 = arith.constant 0 : i32
    return %c0_i32, %c0_i32_0 : i32, i32
  }
  func.func @transform_2(%arg0: i32) -> (i32, i32) {
    %c0_i32 = arith.constant 0 : i32
    %c0_i32_0 = arith.constant 0 : i32
    %c0_i32_1 = arith.constant 0 : i32
    return %c0_i32, %c0_i32_0 : i32, i32
  }
  func.func @transform_3(%arg0: i32) -> (i32, i32) {
    %c0_i32 = arith.constant 0 : i32
    %c0_i32_0 = arith.constant 0 : i32
    return %arg0, %c0_i32 : i32, i32
  }
}

</mosaic_0001>

<bundles_post_ra>
// kernel: tpu_custom_call.1
= control target key start
LH: loop header
LB: loop body
LE: loop exit
PB: predicated region body
PF: predicated region fallthrough
CT: control target
= control target key end

     0   :  { %8 = vsyncpa [#allocation3], 0  ;;  %s905_s0 = inlined_call_operand.hbm [shape: bf16[32,64], index: 0, kind: input, shape index: {}]   ;;  %s906_s1 = inlined_call_operand.hbm [shape: bf16[64,128], index: 1, kind: input, shape index: {}]   ;;  %s907_s2 = inlined_call_operand.vmem [shape: f32[1,128], index: 2, kind: input, shape index: {}]   ;;  %s908_s3 = inlined_call_operand.hbm [shape: f32[32,128], index: 3, kind: output, shape index: {}]  }
   0x1   :  { %10 = vsyncpa [#allocation3 + $0x1], 0 }
   0x2   :  { %11 = vsyncpa [#allocation6], 0 }
   0x3   :  { %12 = vsyncpa [#allocation4], 0 }
   0x4   :  { %14 = vsyncpa [#allocation4 + $0x1], 0  ;;  %s694_s12 = smov 0   ;;  %s696_s13 = smov 0  }
   0x5   :  { %s698_s14 = smov 0   ;;  %s700_s15 = smov 0  }
   0x6 LB: > { %s715_s16 = sadd.s32 4294967295, %s663_s15   ;;  %s417_s17 = sadd.s32 4294967294, %s663_s15   ;;  %s663_s15 = sphi %s700_s15, %s928_s15   ;;  %s659_s14 = sphi %s698_s14, %s927_s14   ;;  %s655_s13 = sphi %s696_s13, %s926_s13   ;;  %s651_s12 = sphi %s694_s12, %s925_s12  }
   0x7   : > { %p40_p0 = scmp.ne.s32.totalorder %s655_s13, %s651_s12  ;;  %p909_p1 = scmp.eq.s32.totalorder %s715_s16, 0 }
   0x8   : > { %p112_p3 = scmp.eq.s32.totalorder %s417_s17, 1  ;;  %p418_p5 = scmp.ge.s32.totalorder %s663_s15, 1 }
   0x9   : > { %p724_p4 = por %p909_p1, %p40_p0  ;;  %p119_p7 = scmp.lt.s32.totalorder %s663_s15, 3 }
   0xa   : > { %p729_p6 = por %p112_p3, %p40_p0  ;;  %s665_s21 = smov [#allocation5]  }
   0xb   : > { %s912_s18 = scalar_select %p724_p4, 1, 0 }
   0xc   : > { %s913_s19 = scalar_select %p729_p6, 1, 0 }
   0xd   : > { %p734_p8 = pnand %p418_p5, %p119_p7  ;;  %s131_s22 = sshll.u32 %s665_s21, 4  ;;  %s738_s22 = int_to_ptr.vmem [resolvable:$true] %s131_s22 }
   0xe   : > { %s750_s24 = sadd.s32 1, %s663_s15   ;;  %s27_s25 = sadd.s32 1, %s659_s14 }
   0xf   : > { %s914_s20 = scalar_select %p734_p8, 1, 0 }
  0x10   : > { %p467_p9 = pneg %p734_p8  ;;  %s24_s26 = ssub.s32 %s663_s15, %s750_s24 }
  0x11   : > { %s535_s29 = scalar_lea.hbm %s906_s1, 512 }
  0x12   : > { %p745_p11 = pnand %p467_p9, %p909_p1  ;;  %p536_p12 = scmp.ne.s32.totalorder %s906_s1, %s535_s29 }
  0x13   : > { %p542_p5 = scmp.lt.u32.totalorder %s535_s29, %s906_s1 }
  0x14   : > { %p537_p13 = pneg %p745_p11 }
  0x16   : > { %p538_p0 = pnand %p537_p13, %p536_p12 }
  0x18   : > { %p539_p3 = pneg %p538_p0 }
  0x1a   : > { %p544_p7 = pnand %p542_p5, %p539_p3 }
  0x1c   : > { %547 = shalt.err (!%p544_p7)
}
  0x1d   : > { %s548_s7 = scalar_lea.vmem %s738_s22, 512  ;;  %p556_p2 = scmp.lt.s32.totalorder %s738_s22, %s738_s22 }
  0x1e   : > { %p549_p9 = scmp.ne.s32.totalorder %s738_s22, %s548_s7  ;;  %p557_p6 = scmp.lt.s32.totalorder %s548_s7, %s548_s7 }
  0x20   : > { %p551_p10 = pnand %p549_p9, %p537_p13  ;;  %p558_p4 = por %p557_p6, %p556_p2 }
  0x22   : > { %p552_p1 = pneg %p551_p10 }
  0x24   : > { %p559_p8 = pnand %p558_p4, %p552_p1 }
  0x26   : > { %562 = shalt.err (!%p559_p8)
}
  0x27   : > { %s666_s8 = smov 64   ;;  %s667_s9 = smov 4  }
  0x28   : > { %470 = dma.hbm_to_vmem [thread:$0]  (!%p745_p11), %s906_s1, 512, %s738_s22, [#allocation6], %s666_s8, %s666_s8, %s667_s9  }
  0x29   : > { %p25_p1 = scmp.eq.s32.totalorder %s24_s26, 0  ;;  %p34_p2 = scmp.ne.s32.totalorder %s659_s14, %s655_s13 }
  0x2a   : > { %p35_p4 = scmp.eq.s32.totalorder %s663_s15, 0  ;;  %p480_p6 = scmp.lt.s32.totalorder %s663_s15, 2 }
  0x2b   : > { %s784_s17 = scalar_select %p25_p1, %s659_s14, %s27_s25  }
  0x2c   : > { %p36_p8 = por %p35_p4, %p34_p2  ;;  %p916_p10 = scmp.eq.s32.totalorder %s715_s16, 1 }
  0x2d   : > { %s148_s23 = sand.u32 1, %s659_s14   ;;  %s440_s27 = sshll.u32 %s663_s15, 7 }
  0x2e   : > { %p788_p12 = por %p916_p10, %p34_p2  ;;  %s421_s28 = sshll.u32 %s148_s23, 3 }
  0x2f   : > { %s797_s4 = scalar_lea.hbm %s905_s0, %s440_s27  ;;  %s152_s22 = scalar_lea.vmem [#allocation2], %s421_s28 }
  0x30   : > { %s159_s25 = sshll.u32 %s152_s22, 4  ;;  %p799_p11 = pnand %p480_p6, %p36_p8  ;;  %s803_s25 = int_to_ptr.vmem [resolvable:$true] %s159_s25 }
  0x31   : > { %s805_s5 = scalar_lea.sflag [#allocation3], %s148_s23  ;;  %s563_s6 = scalar_lea.hbm %s797_s4, 128 }
  0x32   : > { %p564_p13 = scmp.ne.s32.totalorder %s797_s4, %s563_s6  ;;  %p565_p0 = pneg %p799_p11 }
  0x33   : > { %s568_s11 = scalar_lea.hbm %s905_s0, 256  ;;  %p569_p7 = scmp.lt.u32.totalorder %s797_s4, %s905_s0 }
  0x34   : > { %p566_p3 = pnand %p565_p0, %p564_p13  ;;  %p570_p9 = scmp.lt.u32.totalorder %s568_s11, %s563_s6 }
  0x35   : > { %p572_p2 = scmp.lt.u32.totalorder %s563_s6, %s797_s4 }
  0x36   : > { %p567_p5 = pneg %p566_p3  ;;  %p571_p1 = por %p570_p9, %p569_p7 }
  0x38   : > { %p573_p4 = por %p572_p2, %p571_p1 }
  0x3a   : > { %p574_p6 = pnand %p573_p4, %p567_p5 }
  0x3c   : > { %577 = shalt.err (!%p574_p6)
}
  0x3d   : > { %s578_s23 = scalar_lea.vmem %s803_s25, 128  ;;  %s668_s29 = smov [#allocation2]  }
  0x3e   : > { %p579_p8 = scmp.ne.s32.totalorder %s803_s25, %s578_s23  ;;  %s583_s30 = sshll.u32 %s668_s29, 4  ;;  %s584_s30 = int_to_ptr.vmem [resolvable:$false] %s583_s30 }
  0x3f   : > { %s585_s22 = scalar_lea.vmem %s584_s30, 256  ;;  %p586_p3 = scmp.lt.s32.totalorder %s803_s25, %s584_s30 }
  0x40   : > { %p581_p10 = pnand %p579_p8, %p565_p0  ;;  %p587_p7 = scmp.lt.s32.totalorder %s585_s22, %s578_s23 }
  0x42   : > { %p582_p13 = pneg %p581_p10  ;;  %p588_p9 = por %p587_p7, %p586_p3 }
  0x44   : > { %p589_p1 = pnand %p588_p9, %p582_p13 }
  0x46   : > { %592 = shalt.err (!%p589_p1)
}
  0x47   : > { %474 = dma.hbm_to_vmem [thread:$0]  (!%p799_p11), %s797_s4, 128, %s803_s25, %s805_s5, %s666_s8, %s666_s8, %s667_s9  }
  0x48   : > { %p919_p0 = scmp.ne.s32.totalorder %s914_s20, 0 }
  0x49   : > { %s839_s6 = sand.u32 (!%p919_p0), 1, %s655_s13   ;;  %p920_p5 = scmp.ne.s32.totalorder (!%p919_p0), %s912_s18, 0 }
  0x4a   : > { %171 = sbr.rel (%p919_p0) target bundleno = 649 (0x289), region = 32  ;;  %s425_s7 = sshll.u32 (!%p919_p0), %s839_s6, 3 }
  0x4b   : > { %s174_s10 = scalar_lea.sflag (!%p919_p0), [#allocation3], %s839_s6  ;;  %s177_s11 = scalar_lea.vmem (!%p919_p0), [#allocation2], %s425_s7 }
  0x51   : > { %638 = dma.done.wait (%p920_p5), %s174_s10, 128  }
  0x52   : > { %640 = vsyncadd (%p920_p5), %s174_s10, 4294967168  ;;  %p921_p2 = scmp.eq.s32.totalorder %s715_s16, 0 }
  0x54   : > { %642 = dma.done.wait (%p921_p2), [#allocation6], 512   ;;  %p922_p11 = pmov %p921_p2 }
  0x55   : > { %v669_v0 = vmov 0.0   ;;  %vm670_vm0 = vmmov 0   ;;  %v522_v1 = vld [vmem:[#allocation5] sm:$0xff]   ;;  %v523_v2 = vld [vmem:[#allocation5 + $0x8] sm:$0xff]   ;;  %v524_v3 = vld [vmem:[#allocation5 + $0x10] sm:$0xff]   ;;  %vm253_vm1 = vcmask 523264  }
  0x56   : > { %644 = vsyncadd (%p922_p11), [#allocation6], 4294966784  ;;  %447 = vmatprep.subr.bf16.mxu0 %v669_v0  ;;  %455 = vmatprep.mubr.msk.bf16.mxu0 %vm670_vm0, %v669_v0  ;;  %v525_v4 = vld [vmem:[#allocation5 + $0x18] sm:$0xff]   ;;  %v428_v6 = vld [vmem:[%s907_s2] ss:$0 sm:$0xff]  ;;  %s427_s8 = sshll.u32 %s839_s6, 4 }
  0x57   : > { %448 = vmatpush3.bf16.msra.mxu0 %v522_v1  ;;  %v526_v5 = vld [vmem:[%s177_s11] sm:$0xff]   ;;  %s203_s9 = scalar_lea.vmem [#allocation7], %s427_s8  ;;  %s441_s25 = sshll.u32 %s715_s16, 8 }
  0x58   : > { %449 = vmatprep.subr.bf16.mxu0 %v669_v0  ;;  %s334_s4 = sshll.u32 %s203_s9, 4  ;;  %s861_s27 = scalar_lea.hbm %s908_s3, %s441_s25  ;;  %s856_s4 = int_to_ptr.vmem [resolvable:$true] %s334_s4 }
  0x59   : > { %s321_s28 = scalar_lea.sflag [#allocation4], %s839_s6  ;;  %s593_s23 = scalar_lea.vmem %s856_s4, 256 }
  0x5a   : > { %p594_p4 = scmp.ne.s32.totalorder %s856_s4, %s593_s23  ;;  %s671_s16 = smov [#allocation7]  }
  0x5b   : > { %450 = vmatpush3.bf16.msra.mxu0 %v523_v2  ;;  %s597_s29 = sshll.u32 %s671_s16, 4  ;;  %s598_s29 = int_to_ptr.vmem [resolvable:$false] %s597_s29 }
  0x5c   : > { %451 = vmatprep.subr.bf16.mxu0 %v669_v0  ;;  %p595_p6 = pnand %p594_p4, %p788_p12  ;;  %s599_s30 = scalar_lea.vmem %s598_s29, 512 }
  0x5d   : > { %p600_p10 = scmp.lt.s32.totalorder %s856_s4, %s598_s29  ;;  %p601_p13 = scmp.lt.s32.totalorder %s599_s30, %s593_s23 }
  0x5e   : > { %p596_p8 = pneg %p595_p6 }
  0x5f   : > { %452 = vmatpush3.bf16.msra.mxu0 %v524_v3  ;;  %p602_p3 = por %p601_p13, %p600_p10 }
  0x60   : > { %453 = vmatprep.subr.bf16.mxu0 %v669_v0 }
  0x61   : > { %p603_p7 = pnand %p602_p3, %p596_p8 }
  0x63   : > { %454 = vmatpush3.bf16.msra.mxu0 %v525_v4 }
  0x66   : > { %456 = vmatmul.mubr.msk.bf16.vlgmr.msra.gmra.mrb[0].mxu0 %vm253_vm1, %v526_v5 }
 0x139   : > { %v291_v7 = vpop.f32.mrb[0].mxu0 }
 0x13a   : > { %v292_v8 = vadd.f32 %v428_v6, %v291_v7  ;;  %v457_v9 = vpop.f32.mrb[1].mxu0 }
 0x13b   : > { %v294_v10 = vpop.f32.mrb[2].mxu0 }
 0x13c   : > { %298 = vmax.xlane.f32.xlu0 %v292_v8  ;;  %v458_v11 = vpop.f32.mrb[3].mxu0  ;;  %v295_v12 = vadd.f32 %v428_v6, %v294_v10 }
 0x140   : > { %300 = vmax.xlane.f32.xlu0 %v295_v12 }
 0x1c9   : > { %v299_v13 = vpop.xlane.xlu0 %298 }
 0x1ca   : > { %v302_v14 = vsub.f32 %v292_v8, %v299_v13 }
 0x1cc   : > { %v304_v15 = vmul.f32 1.442695, %v302_v14 }
 0x1cd   : > { %v301_v16 = vpop.xlane.xlu0 %300 }
 0x1ce   : > { %v303_v17 = vsub.f32 %v295_v12, %v301_v16  ;;  %527 = vpow2.f32 %v304_v15 }
 0x1d0   : > { %v306_v18 = vmul.f32 1.442695, %v303_v17 }
 0x1d2   : > { %529 = vpow2.f32 %v306_v18 }
 0x1d8   : > { %v528_v19 = vpop.eup %527 }
 0x1d9   : > { %308 = vadd.xlane.f32.xlu1 %v528_v19 }
 0x1dc   : > { %v530_v20 = vpop.eup %529 }
 0x1dd   : > { %310 = vadd.xlane.f32.xlu1 %v530_v20 }
 0x266   : > { %v309_v21 = vpop.xlane.xlu1 %308 }
 0x267   : > { %531 = vlog2.f32 %v309_v21 }
 0x26a   : > { %v311_v22 = vpop.xlane.xlu1 %310 }
 0x26b   : > { %533 = vlog2.f32 %v311_v22 }
 0x271   : > { %v532_v23 = vpop.eup %531 }
 0x272   : > { %v313_v24 = vmul.f32 0.6931472, %v532_v23 }
 0x274   : > { %v316_v25 = vsub.f32 %v302_v14, %v313_v24 }
 0x275   : > { %v534_v26 = vpop.eup %533 }
 0x276   : > { %318 = vst [vmem:[%s203_s9] sm:$0xff] %v316_v25  ;;  %v315_v27 = vmul.f32 0.6931472, %v534_v26 }
 0x278   : > { %v317_v28 = vsub.f32 %v303_v17, %v315_v27 }
 0x27a   : > { %319 = vst [vmem:[%s203_s9 + $0x8] sm:$0xff] %v317_v28 }
 0x27b   : > { %606 = shalt.err (!%p603_p7)
}
 0x27c   : > { %s607_s22 = scalar_lea.hbm %s861_s27, 256  ;;  %s611_s11 = scalar_lea.hbm %s908_s3, 512 }
 0x27d   : > { %p608_p9 = scmp.ne.s32.totalorder %s861_s27, %s607_s22  ;;  %p612_p5 = scmp.lt.u32.totalorder %s861_s27, %s908_s3 }
 0x27e   : > { %p613_p2 = scmp.lt.u32.totalorder %s611_s11, %s607_s22  ;;  %p615_p4 = scmp.lt.u32.totalorder %s607_s22, %s861_s27 }
 0x27f   : > { %p609_p1 = pnand %p608_p9, %p788_p12 }
 0x280   : > { %p614_p11 = por %p613_p2, %p612_p5 }
 0x281   : > { %p610_p0 = pneg %p609_p1 }
 0x282   : > { %p616_p6 = por %p615_p4, %p614_p11 }
 0x284   : > { %p617_p8 = pnand %p616_p6, %p610_p0 }
 0x286   : > { %620 = shalt.err (!%p617_p8)
}
 0x287   : > { %s672_s8 = smov 128   ;;  %s673_s9 = smov 8  }
 0x288   : > { %465 = dma.vmem_to_hbm [thread:$0]  (%p788_p12), %s856_s4, 256, %s861_s27, %s321_s28, %s672_s8, %s672_s8, %s673_s9  }
 0x289 PF: > { %s349_s25 = sand.u32 1, %s651_s12   ;;  %p923_p10 = scmp.ne.s32.totalorder %s913_s19, 0 }
 0x28a   : > { %p924_p13 = scmp.ge.s32.totalorder %s663_s15, 2  ;;  %s350_s26 = scalar_lea.sflag [#allocation4], %s349_s25 }
 0x28c   : > { %p476_p3 = pnand %p924_p13, %p923_p10 }
 0x28e   : > { %646 = dma.done.wait (!%p476_p3), %s350_s26, 256  }
 0x28f   : > { %648 = vsyncadd (!%p476_p3), %s350_s26, 4294967040  ;;  %p17_p7 = scmp.ge.s32.totalorder %s750_s24, 4   ;;  %s925_s12 = smov %s655_s13 }
 0x290   : > { %s926_s13 = smov %s659_s14  ;;  %s927_s14 = smov %s784_s17 }
 0x291   : > { %s928_s15 = smov %s750_s24  ;;  %19 = sbr.rel (!%p17_p7) target bundleno = 6 (0x6), region = 81 }
 0x298   :  { %355 = vsyncpa [#allocation3], 1 }
 0x299   :  { %357 = vsyncpa [#allocation3 + $0x1], 1 }
 0x29a   :  { %358 = vsyncpa [#allocation6], 1 }
 0x29b   :  { %359 = vsyncpa [#allocation4], 1 }
 0x29c   :  { %361 = vsyncpa [#allocation4 + $0x1], 1 }

</bundles_post_ra>
